<compile_context>
chip_gen: v5e
topology: v5e:2x2
jax: 0.10.0
libtpu: 0.0.40
codegen_flags: <defaults>
</compile_context>

<pallas_src>
import jax
import jax.numpy as jnp
from jax.experimental import pallas as pl
from jax.experimental.pallas import tpu as pltpu

_HIDDEN1 = 128      # code_hidden1 output width (already lane-aligned)
_HIDDEN2_PAD = 128  # code_hidden2 output width padded 84 -> 128
_CLASS_PAD = 128    # n_output padded -> 128
_NEG_BIG = -1e30    # finite "minus infinity" for padded class logits


def _fused_xent_mlp_kernel(x_ref, onehot_ref,
                           w1_ref, b1_ref, w2_ref, b2_ref, w3_ref, b3_ref,
                           out_ref):
    """One fused pass: (2B,F) -> 3-layer MLP -> logits -> mean CE over all 2B rows."""
    x = x_ref[...]

    # 3-layer MLP (relu, relu, linear) on the MXU, all lane-aligned tiles.
    h1 = jnp.dot(x, w1_ref[...], preferred_element_type=jnp.float32) + b1_ref[...]
    h1 = jnp.maximum(h1, 0.0)
    h2 = jnp.dot(h1, w2_ref[...], preferred_element_type=jnp.float32) + b2_ref[...]
    h2 = jnp.maximum(h2, 0.0)
    logits = jnp.dot(h2, w3_ref[...], preferred_element_type=jnp.float32) + b3_ref[...]

    # Numerically-stable cross-entropy with precomputed one-hot targets.
    # Padded classes carry logit ~ -1e30 -> exp underflows to 0 in the
    # denominator; one-hot is 0 there (0 * -1e30 = 0), so `picked` is exact.
    m = jnp.max(logits, axis=-1, keepdims=True)
    lse = jnp.log(jnp.sum(jnp.exp(logits - m), axis=-1, keepdims=True)) + m
    picked = jnp.sum(logits * onehot_ref[...], axis=-1, keepdims=True)

    # mean over 2B rows == (CE_code + CE_desc) / 2  (both batches have B rows).
    out_ref[0, 0] = jnp.mean(lse - picked)


@jax.jit
def all_net_loss(codevec, codelabel, descvec, desclabel, params):
    """Packs/pads operands, calls the Pallas kernel, returns the scalar loss."""
    w1, b1, w2, b2, w3, b3 = params
    B, F = codevec.shape
    h2_real = w2.shape[1]        # 84
    n_out = w3.shape[1]          # n_output

    # Fuse the two branches into one batched pass.
    x = jnp.concatenate([codevec, descvec], axis=0).astype(jnp.float32)        # (2B, F)
    labels = jnp.concatenate([codelabel, desclabel], axis=0).astype(jnp.int32)  # (2B,)
    onehot = jax.nn.one_hot(labels, _CLASS_PAD, dtype=jnp.float32)              # (2B, 128)

    # Lane-align the 84-wide hidden dim and the n_out-wide class dim.
    w2p = jnp.pad(w2.astype(jnp.float32), ((0, 0), (0, _HIDDEN2_PAD - h2_real)))
    b2p = jnp.pad(b2.astype(jnp.float32), ((0, 0), (0, _HIDDEN2_PAD - h2_real)))
    w3p = jnp.pad(w3.astype(jnp.float32),
                  ((0, _HIDDEN2_PAD - h2_real), (0, _CLASS_PAD - n_out)))
    b3p = jnp.pad(b3.astype(jnp.float32), ((0, 0), (0, _CLASS_PAD - n_out)),
                  constant_values=_NEG_BIG)

    def full(shape):
        return pl.BlockSpec(shape, lambda: tuple(0 for _ in shape))

    out = pl.pallas_call(
        _fused_xent_mlp_kernel,
        out_shape=jax.ShapeDtypeStruct((1, 1), jnp.float32),
        grid_spec=pltpu.PrefetchScalarGridSpec(
            num_scalar_prefetch=0,
            grid=(),  # single invocation; all operands VMEM-resident
            in_specs=[
                full((2 * B, F)),                                         # fused input
                full((2 * B, _CLASS_PAD)),                                # one-hot labels
                full((F, _HIDDEN1)), full((1, _HIDDEN1)),                 # code_hidden1
                full((_HIDDEN1, _HIDDEN2_PAD)), full((1, _HIDDEN2_PAD)),  # code_hidden2 (padded)
                full((_HIDDEN2_PAD, _CLASS_PAD)), full((1, _CLASS_PAD)),  # code_out (padded)
            ],
            out_specs=pl.BlockSpec(memory_space=pltpu.MemorySpace.SMEM),
        ),
    )(x, onehot,
      w1.astype(jnp.float32), b1.astype(jnp.float32),
      w2p, b2p, w3p, b3p)
    return out[0, 0]


def init_linear(key, fan_in, fan_out):
    """PyTorch-style Linear init: U(-1/sqrt(fan_in), 1/sqrt(fan_in))."""
    kw, kb = jax.random.split(key)
    bound = 1.0 / jnp.sqrt(jnp.float32(fan_in))
    w = jax.random.uniform(kw, (fan_in, fan_out), jnp.float32, -bound, bound)
    b = jax.random.uniform(kb, (1, fan_out), jnp.float32, -bound, bound)
    return w, b


def reference_loss(codevec, codelabel, descvec, desclabel, params):
    """Pure-JAX reference mirroring the PyTorch forward exactly."""
    w1, b1, w2, b2, w3, b3 = params

    def getclass(x):
        h1 = jax.nn.relu(x @ w1 + b1)
        h2 = jax.nn.relu(h1 @ w2 + b2)
        return h2 @ w3 + b3

    def ce(logits, labels):
        logp = jax.nn.log_softmax(logits, axis=-1)
        return -jnp.mean(jnp.take_along_axis(logp, labels[:, None], axis=-1))

    cl = ce(getclass(codevec), codelabel.astype(jnp.int32))
    dl = ce(getclass(descvec), desclabel.astype(jnp.int32))
    return (cl + dl) / 2.0


if __name__ == "__main__":
    # Small shapes consistent with the module: batch=8, n_feature=32, n_output=10.
    B, n_feature, n_output = 8, 32, 10

    key = jax.random.PRNGKey(0)
    k_cx, k_dx, k_cl, k_dl, k1, k2, k3, k4, k5, k6 = jax.random.split(key, 10)

    codevec = jax.random.normal(k_cx, (B, n_feature), jnp.float32)
    descvec = jax.random.normal(k_dx, (B, n_feature), jnp.float32)
    codelabel = jax.random.randint(k_cl, (B,), 0, n_output, jnp.int32)
    desclabel = jax.random.randint(k_dl, (B,), 0, n_output, jnp.int32)

    # code_* branch parameters (the ones forward actually uses).
    w1, b1 = init_linear(k1, n_feature, 128)
    w2, b2 = init_linear(k2, 128, 84)
    w3, b3 = init_linear(k3, 84, n_output)
    # desc_* branch parameters exist in __init__ but are unused by forward
    # (forward calls getclass for both inputs) — instantiated for fidelity only.
    _dw1, _db1 = init_linear(k4, n_feature, 128)
    _dw2, _db2 = init_linear(k5, 128, 84)
    _dw3, _db3 = init_linear(k6, 84, n_output)

    params = (w1, b1, w2, b2, w3, b3)

    loss = all_net_loss(codevec, codelabel, descvec, desclabel, params)
    loss = jax.block_until_ready(loss)

    ref = reference_loss(codevec, codelabel, descvec, desclabel, params)
    assert jnp.allclose(loss, ref, rtol=1e-5, atol=1e-5), (loss, ref)

    print("KERNEL_OK")
</pallas_src>

<mosaic_0001>
module attributes {stable_mosaic.version = 11 : i64} {
  func.func @_fused_xent_mlp_kernel(%arg0: memref<16x32xf32, #tpu.memory_space<vmem>>, %arg1: memref<16x128xf32, #tpu.memory_space<vmem>>, %arg2: memref<32x128xf32, #tpu.memory_space<vmem>>, %arg3: memref<1x128xf32, #tpu.memory_space<vmem>>, %arg4: memref<128x128xf32, #tpu.memory_space<vmem>>, %arg5: memref<1x128xf32, #tpu.memory_space<vmem>>, %arg6: memref<128x128xf32, #tpu.memory_space<vmem>>, %arg7: memref<1x128xf32, #tpu.memory_space<vmem>>, %arg8: memref<1x1xf32, #tpu.memory_space<smem>>) attributes {dimension_semantics = [], scalar_prefetch = 0 : i64, scratch_operands = 0 : i64, tpu.core_type = #tpu.core_type<tc>} {
    %c0 = arith.constant 0 : index
    %c0_0 = arith.constant 0 : index
    %0 = vector.load %arg0[%c0, %c0_0] : memref<16x32xf32, #tpu.memory_space<vmem>>, vector<16x32xf32>
    %c0_1 = arith.constant 0 : index
    %c0_2 = arith.constant 0 : index
    %1 = vector.load %arg2[%c0_1, %c0_2] : memref<32x128xf32, #tpu.memory_space<vmem>>, vector<32x128xf32>
    %cst = arith.constant dense<0.000000e+00> : vector<16x128xf32>
    %2 = tpu.matmul %0, %1, %cst {dimension_numbers = #tpu.dot_dimension_numbers<[1], [0], [0], [1], [0, 0, 1, 1], [], []>} : vector<16x32xf32>, vector<32x128xf32>, vector<16x128xf32> -> vector<16x128xf32>
    %c0_3 = arith.constant 0 : index
    %c0_4 = arith.constant 0 : index
    %3 = vector.load %arg3[%c0_3, %c0_4] : memref<1x128xf32, #tpu.memory_space<vmem>>, vector<1x128xf32>
    %4 = vector.broadcast %3 : vector<1x128xf32> to vector<16x128xf32>
    %5 = arith.addf %2, %4 : vector<16x128xf32>
    %cst_5 = arith.constant 0.000000e+00 : f32
    %6 = vector.broadcast %cst_5 : f32 to vector<16x128xf32>
    %7 = arith.maximumf %5, %6 : vector<16x128xf32>
    %c0_6 = arith.constant 0 : index
    %c0_7 = arith.constant 0 : index
    %8 = vector.load %arg4[%c0_6, %c0_7] : memref<128x128xf32, #tpu.memory_space<vmem>>, vector<128x128xf32>
    %cst_8 = arith.constant dense<0.000000e+00> : vector<16x128xf32>
    %9 = tpu.matmul %7, %8, %cst_8 {dimension_numbers = #tpu.dot_dimension_numbers<[1], [0], [0], [1], [0, 0, 1, 1], [], []>} : vector<16x128xf32>, vector<128x128xf32>, vector<16x128xf32> -> vector<16x128xf32>
    %c0_9 = arith.constant 0 : index
    %c0_10 = arith.constant 0 : index
    %10 = vector.load %arg5[%c0_9, %c0_10] : memref<1x128xf32, #tpu.memory_space<vmem>>, vector<1x128xf32>
    %11 = vector.broadcast %10 : vector<1x128xf32> to vector<16x128xf32>
    %12 = arith.addf %9, %11 : vector<16x128xf32>
    %cst_11 = arith.constant 0.000000e+00 : f32
    %13 = vector.broadcast %cst_11 : f32 to vector<16x128xf32>
    %14 = arith.maximumf %12, %13 : vector<16x128xf32>
    %c0_12 = arith.constant 0 : index
    %c0_13 = arith.constant 0 : index
    %15 = vector.load %arg6[%c0_12, %c0_13] : memref<128x128xf32, #tpu.memory_space<vmem>>, vector<128x128xf32>
    %cst_14 = arith.constant dense<0.000000e+00> : vector<16x128xf32>
    %16 = tpu.matmul %14, %15, %cst_14 {dimension_numbers = #tpu.dot_dimension_numbers<[1], [0], [0], [1], [0, 0, 1, 1], [], []>} : vector<16x128xf32>, vector<128x128xf32>, vector<16x128xf32> -> vector<16x128xf32>
    %c0_15 = arith.constant 0 : index
    %c0_16 = arith.constant 0 : index
    %17 = vector.load %arg7[%c0_15, %c0_16] : memref<1x128xf32, #tpu.memory_space<vmem>>, vector<1x128xf32>
    %18 = vector.broadcast %17 : vector<1x128xf32> to vector<16x128xf32>
    %19 = arith.addf %16, %18 : vector<16x128xf32>
    %cst_17 = arith.constant dense<0xFF800000> : vector<16xf32>
    %20 = vector.multi_reduction <maximumf>, %19, %cst_17 [1] : vector<16x128xf32> to vector<16xf32>
    %21 = vector.shape_cast %20 : vector<16xf32> to vector<16x1xf32>
    %22 = vector.broadcast %21 : vector<16x1xf32> to vector<16x128xf32>
    %23 = arith.subf %19, %22 : vector<16x128xf32>
    %24 = math.exp %23 : vector<16x128xf32>
    %cst_18 = arith.constant dense<0.000000e+00> : vector<16xf32>
    %25 = vector.multi_reduction <add>, %24, %cst_18 [1] : vector<16x128xf32> to vector<16xf32>
    %26 = vector.shape_cast %25 : vector<16xf32> to vector<16x1xf32>
    %27 = math.log %26 : vector<16x1xf32>
    %28 = arith.addf %27, %21 : vector<16x1xf32>
    %c0_19 = arith.constant 0 : index
    %c0_20 = arith.constant 0 : index
    %29 = vector.load %arg1[%c0_19, %c0_20] : memref<16x128xf32, #tpu.memory_space<vmem>>, vector<16x128xf32>
    %30 = arith.mulf %19, %29 : vector<16x128xf32>
    %cst_21 = arith.constant dense<0.000000e+00> : vector<16xf32>
    %31 = vector.multi_reduction <add>, %30, %cst_21 [1] : vector<16x128xf32> to vector<16xf32>
    %32 = vector.shape_cast %31 : vector<16xf32> to vector<16x1xf32>
    %33 = arith.subf %28, %32 : vector<16x1xf32>
    %34 = vector.shape_cast %33 : vector<16x1xf32> to vector<1x16x1xf32>
    %cst_22 = arith.constant dense<0.000000e+00> : vector<1xf32>
    %35 = vector.multi_reduction <add>, %34, %cst_22 [1, 2] : vector<1x16x1xf32> to vector<1xf32>
    %36 = vector.shape_cast %35 : vector<1xf32> to vector<1x1x1xf32>
    %37 = vector.extract %36[0, 0, 0] : f32 from vector<1x1x1xf32>
    %cst_23 = arith.constant 1.600000e+01 : f32
    %38 = arith.divf %37, %cst_23 : f32
    %c0_24 = arith.constant 0 : index
    %c0_25 = arith.constant 0 : index
    %39 = memref.load %arg8[%c0_24, %c0_25] : memref<1x1xf32, #tpu.memory_space<smem>>
    memref.store %38, %arg8[%c0_24, %c0_25] : memref<1x1xf32, #tpu.memory_space<smem>>
    return
  }
}

</mosaic_0001>

<bundles_post_ra>
// kernel: all_net_loss.1
= control target key start
LH: loop header
LB: loop body
LE: loop exit
PB: predicated region body
PF: predicated region fallthrough
CT: control target
= control target key end

     0   :  { %vm40_vm0 = vcmask 261120   ;;  %s461_s0 = inlined_call_operand.vmem [shape: f32[16,32], index: 0, kind: input, shape index: {}]   ;;  %s462_s1 = inlined_call_operand.vmem [shape: f32[16,128], index: 1, kind: input, shape index: {}]   ;;  %s463_s2 = inlined_call_operand.vmem [shape: f32[32,128], index: 2, kind: input, shape index: {}]   ;;  %s464_s3 = inlined_call_operand.vmem [shape: f32[1,128], index: 3, kind: input, shape index: {}]   ;;  %s465_s4 = inlined_call_operand.vmem [shape: f32[128,128], index: 4, kind: input, shape index: {}]   ;;  %s466_s5 = inlined_call_operand.vmem [shape: f32[1,128], index: 5, kind: input, shape index: {}]   ;;  %s467_s6 = inlined_call_operand.vmem [shape: f32[128,128], index: 6, kind: input, shape index: {}]   ;;  %s468_s7 = inlined_call_operand.vmem [shape: f32[1,128], index: 7, kind: input, shape index: {}]   ;;  %s469_s8 = inlined_call_operand.hbm [shape: f32[1,1], index: 8, kind: output, shape index: {}]  }
   0x1   :  { %v35_v0 = vld [vmem:[%s463_s2 + $0x18] sm:$0xff]  ;;  %v34_v1 = vld [vmem:[%s463_s2 + $0x10] sm:$0xff]  ;;  %v33_v2 = vld [vmem:[%s463_s2 + $0x8] sm:$0xff] }
   0x2   :  { %59 = vmatpush.msra.mxu0 %v35_v0  ;;  %v87_v3 = vld [vmem:[%s465_s4 + $0x78] sm:$0xff]  ;;  %v86_v4 = vld [vmem:[%s465_s4 + $0x70] sm:$0xff]  ;;  %v32_v5 = vld [vmem:[%s463_s2] sm:$0xff] }
   0x3   :  { %92 = vmatpush.msra.mxu1 %v87_v3  ;;  %v85_v6 = vld [vmem:[%s465_s4 + $0x68] sm:$0xff]  ;;  %231 = vmatpush.msra.mxu3 %v87_v3  ;;  %v30_v7 = vld [vmem:[%s461_s0] sm:$0xff] }
   0x4   :  { %60 = vmatpush.msra.mxu0 %v34_v1  ;;  %v84_v8 = vld [vmem:[%s465_s4 + $0x60] sm:$0xff] }
   0x5   :  { %93 = vmatpush.msra.mxu1 %v86_v4  ;;  %232 = vmatpush.msra.mxu3 %v86_v4 }
   0x6   :  { %61 = vmatpush.msra.mxu0 %v33_v2 }
   0x7   :  { %94 = vmatpush.msra.mxu1 %v85_v6 }
   0x8   :  { %62 = vmatpush.msra.mxu0 %v32_v5 }
   0x9   :  { %13 = vsyncpa [#allocation3], 0  ;;  %229 = vmatmul.msk.f32.vlgmr.msra.gmra.mxu0 %vm40_vm0, %v30_v7  ;;  %v83_v9 = vld [vmem:[%s465_s4 + $0x58] sm:$0xff]  ;;  %233 = vmatpush.msra.mxu3 %v85_v6  ;;  %v82_v10 = vld [vmem:[%s465_s4 + $0x50] sm:$0xff]  ;;  %vm190_vm1 = vcmask 7168   ;;  %s219_s14 = sshll.u32 %s469_s8, 4  ;;  %s220_s14 = int_to_ptr.hbm [resolvable:$true] %s219_s14 }
   0xa   :  { %95 = vmatpush.msra.mxu1 %v84_v8  ;;  %v81_v11 = vld [vmem:[%s465_s4 + $0x48] sm:$0xff]  ;;  %v80_v13 = vld [vmem:[%s465_s4 + $0x40] sm:$0xff]  ;;  %v79_v14 = vld [vmem:[%s465_s4 + $0x38] sm:$0xff]  ;;  %s281_s18 = smov [#allocation2]  }
   0xb   :  { %234 = vmatpush.msra.mxu3 %v84_v8  ;;  %v31_v12 = vld [vmem:[%s461_s0 + $0x8] sm:$0xff]  ;;  %v78_v15 = vld [vmem:[%s465_s4 + $0x30] sm:$0xff]  ;;  %v76_v17 = vld [vmem:[%s465_s4 + $0x20] sm:$0xff] }
   0xc   :  { %96 = vmatpush.msra.mxu1 %v83_v9  ;;  %v77_v16 = vld [vmem:[%s465_s4 + $0x28] sm:$0xff]  ;;  %v75_v18 = vld [vmem:[%s465_s4 + $0x18] sm:$0xff]  ;;  %v74_v19 = vld [vmem:[%s465_s4 + $0x10] sm:$0xff] }
   0xd   :  { %235 = vmatpush.msra.mxu3 %v83_v9  ;;  %v73_v20 = vld [vmem:[%s465_s4 + $0x8] sm:$0xff]  ;;  %v72_v21 = vld [vmem:[%s465_s4] sm:$0xff]  ;;  %v132_v22 = vld [vmem:[%s467_s6 + $0x78] sm:$0xff] }
   0xe   :  { %97 = vmatpush.msra.mxu1 %v82_v10  ;;  %v131_v23 = vld [vmem:[%s467_s6 + $0x70] sm:$0xff]  ;;  %137 = vmatpush.msra.mxu2 %v132_v22  ;;  %v130_v24 = vld [vmem:[%s467_s6 + $0x68] sm:$0xff]  ;;  %v129_v25 = vld [vmem:[%s467_s6 + $0x60] sm:$0xff] }
   0xf   :  { %236 = vmatpush.msra.mxu3 %v82_v10  ;;  %v128_v26 = vld [vmem:[%s467_s6 + $0x58] sm:$0xff]  ;;  %v127_v27 = vld [vmem:[%s467_s6 + $0x50] sm:$0xff]  ;;  %v126_v28 = vld [vmem:[%s467_s6 + $0x48] sm:$0xff] }
  0x10   :  { %98 = vmatpush.msra.mxu1 %v81_v11  ;;  %138 = vmatpush.msra.mxu2 %v131_v23  ;;  %v125_v29 = vld [vmem:[%s467_s6 + $0x40] sm:$0xff]  ;;  %v124_v30 = vld [vmem:[%s467_s6 + $0x38] sm:$0xff]  ;;  %v123_v32 = vld [vmem:[%s467_s6 + $0x30] sm:$0xff] }
  0x11   :  { %230 = vmatmul.msk.f32.gmra.mxu0 %vm40_vm0, %v31_v12  ;;  %237 = vmatpush.msra.mxu3 %v81_v11  ;;  %v253_v31 = vld [vmem:[%s464_s3] ss:$0 sm:$0xff]  ;;  %v122_v33 = vld [vmem:[%s467_s6 + $0x28] sm:$0xff]  ;;  %v120_v38 = vld [vmem:[%s467_s6 + $0x18] sm:$0xff] }
  0x12   :  { %99 = vmatpush.msra.mxu1 %v80_v13  ;;  %139 = vmatpush.msra.mxu2 %v130_v24  ;;  %v121_v36 = vld [vmem:[%s467_s6 + $0x20] sm:$0xff]  ;;  %v119_v42 = vld [vmem:[%s467_s6 + $0x10] sm:$0xff]  ;;  %v118_v43 = vld [vmem:[%s467_s6 + $0x8] sm:$0xff] }
  0x13   :  { %238 = vmatpush.msra.mxu3 %v80_v13  ;;  %v117_v44 = vld [vmem:[%s467_s6] sm:$0xff]  ;;  %v181_v58 = vld [vmem:[%s462_s1 + $0x8] sm:$0xff] }
  0x14   :  { %100 = vmatpush.msra.mxu1 %v79_v14  ;;  %140 = vmatpush.msra.mxu2 %v129_v25  ;;  %v254_v45 = vld [vmem:[%s466_s5] ss:$0 sm:$0xff] }
  0x15   :  { %239 = vmatpush.msra.mxu3 %v79_v14  ;;  %v255_v52 = vld [vmem:[%s468_s7] ss:$0 sm:$0xff] }
  0x16   :  { %101 = vmatpush.msra.mxu1 %v78_v15  ;;  %141 = vmatpush.msra.mxu2 %v128_v26  ;;  %v180_v54 = vld [vmem:[%s462_s1] sm:$0xff] }
  0x17   :  { %240 = vmatpush.msra.mxu3 %v78_v15 }
  0x18   :  { %102 = vmatpush.msra.mxu1 %v77_v16  ;;  %142 = vmatpush.msra.mxu2 %v127_v27 }
  0x19   :  { %241 = vmatpush.msra.mxu3 %v77_v16 }
  0x1a   :  { %103 = vmatpush.msra.mxu1 %v76_v17  ;;  %143 = vmatpush.msra.mxu2 %v126_v28 }
  0x1b   :  { %242 = vmatpush.msra.mxu3 %v76_v17 }
  0x1c   :  { %104 = vmatpush.msra.mxu1 %v75_v18  ;;  %144 = vmatpush.msra.mxu2 %v125_v29 }
  0x1d   :  { %243 = vmatpush.msra.mxu3 %v75_v18 }
  0x1e   :  { %105 = vmatpush.msra.mxu1 %v74_v19  ;;  %145 = vmatpush.msra.mxu2 %v124_v30 }
  0x1f   :  { %244 = vmatpush.msra.mxu3 %v74_v19 }
  0x20   :  { %106 = vmatpush.msra.mxu1 %v73_v20  ;;  %146 = vmatpush.msra.mxu2 %v123_v32 }
  0x21   :  { %245 = vmatpush.msra.mxu3 %v73_v20  ;;  %v280_v20 = vmov 16.0  }
  0x22   :  { %107 = vmatpush.msra.mxu1 %v72_v21  ;;  %147 = vmatpush.msra.mxu2 %v122_v33 }
  0x23   :  { %246 = vmatpush.msra.mxu3 %v72_v21 }
  0x24   :  { %148 = vmatpush.msra.mxu2 %v121_v36 }
  0x26   :  { %149 = vmatpush.msra.mxu2 %v120_v38 }
  0x28   :  { %150 = vmatpush.msra.mxu2 %v119_v42 }
  0x2a   :  { %151 = vmatpush.msra.mxu2 %v118_v43 }
  0x2c   :  { %152 = vmatpush.msra.mxu2 %v117_v44 }
  0x86   :  { %v64_v34 = vpop.f32.mrf.mxu0 }
  0x87   :  { %v65_v35 = vadd.f32 %v253_v31, %v64_v34 }
  0x89   :  { %v70_v37 = vmax.f32 %v65_v35, 0.0 }
  0x8b   :  { %108 = vmatmul.f32.vlgmr.msra.gmra.mxu1 %v70_v37 }
  0x8e   :  { %v67_v39 = vpop.f32.mrf.mxu0 }
  0x8f   :  { %v68_v40 = vadd.f32 %v253_v31, %v67_v39 }
  0x91   :  { %v71_v41 = vmax.f32 %v68_v40, 0.0 }
  0x93   :  { %111 = vmatmul.f32.vlgmr.msra.gmra.mxu3 %v71_v41 }
 0x108   :  { %v109_v46 = vpop.f32.mrf.mxu1 }
 0x109   :  { %v110_v47 = vadd.f32 %v254_v45, %v109_v46 }
 0x10b   :  { %v115_v48 = vmax.f32 %v110_v47, 0.0 }
 0x10d   :  { %153 = vmatmul.f32.vlgmr.msra.gmra.mxu2 %v115_v48 }
 0x116   :  { %v112_v49 = vpop.f32.mrf.mxu3 }
 0x117   :  { %v113_v50 = vadd.f32 %v254_v45, %v112_v49 }
 0x119   :  { %v116_v51 = vmax.f32 %v113_v50, 0.0 }
 0x11b   :  { %156 = vmatmul.f32.gmra.mxu2 %v116_v51 }
 0x190   :  { %v154_v53 = vpop.f32.mrf.mxu2 }
 0x191   :  { %v155_v55 = vadd.f32 %v255_v52, %v154_v53 }
 0x193   :  { %160 = vmax.xlane.f32.xlu0 %v155_v55  ;;  %v182_v56 = vmul.f32 %v180_v54, %v155_v55 }
 0x195   :  { %184 = vadd.xlane.f32.xlu2 %v182_v56 }
 0x19e   :  { %v157_v57 = vpop.f32.mrf.mxu2 }
 0x19f   :  { %v158_v59 = vadd.f32 %v255_v52, %v157_v57 }
 0x1a1   :  { %162 = vmax.xlane.f32.xlu0 %v158_v59  ;;  %v183_v60 = vmul.f32 %v181_v58, %v158_v59 }
 0x1a3   :  { %186 = vadd.xlane.f32.xlu2 %v183_v60 }
 0x206   :  { %v161_v61 = vpop.xlane.xlu0 %160 }
 0x207   :  { %v164_v62 = vsub.f32 %v155_v55, %v161_v61 }
 0x208   :  { %v185_v9 = vpop.xlane.xlu2 %184 }
 0x209   :  { %v166_v63 = vmul.f32 1.442695, %v164_v62 }
 0x20b   :  { %256 = vpow2.f32 %v166_v63 }
 0x211   :  { %v257_v0 = vpop.eup %256 }
 0x212   :  { %170 = vadd.xlane.f32.xlu1 %v257_v0 }
 0x214   :  { %v163_v1 = vpop.xlane.xlu0 %162 }
 0x215   :  { %v165_v2 = vsub.f32 %v158_v59, %v163_v1 }
 0x216   :  { %v187_v15 = vpop.xlane.xlu2 %186 }
 0x217   :  { %v168_v3 = vmul.f32 1.442695, %v165_v2 }
 0x219   :  { %258 = vpow2.f32 %v168_v3 }
 0x21f   :  { %v259_v4 = vpop.eup %258 }
 0x220   :  { %172 = vadd.xlane.f32.xlu1 %v259_v4 }
 0x285   :  { %v171_v5 = vpop.xlane.xlu1 %170 }
 0x286   :  { %260 = vlog2.f32 %v171_v5 }
 0x28c   :  { %v261_v6 = vpop.eup %260 }
 0x28d   :  { %v175_v8 = vmul.f32 0.6931472, %v261_v6 }
 0x28f   :  { %v178_v10 = vadd.f32 %v175_v8, %v161_v61 }
 0x291   :  { %v188_v14 = vsub.f32 %v178_v10, %v185_v9 }
 0x293   :  { %v173_v7 = vpop.xlane.xlu1 %172  ;;  %v191_v17 = vsel %vm190_vm1, %v188_v14, 0.0 }
 0x294   :  { %262 = vlog2.f32 %v173_v7 }
 0x295   :  { %264 = vrcp.f32 %v280_v20 }
 0x29a   :  { %v263_v11 = vpop.eup %262 }
 0x29b   :  { %v177_v12 = vmul.f32 0.6931472, %v263_v11  ;;  %v265_v21 = vpop.eup %264 }
 0x29c   :  { %v204_v22 = vmul.f32 16.0, %v265_v21  ;;  %vm208_vm2 = vweird.f32 %v265_v21 }
 0x29d   :  { %v179_v13 = vadd.f32 %v177_v12, %v163_v1 }
 0x29e   :  { %v205_v23 = vsub.f32 1.0, %v204_v22 }
 0x29f   :  { %v189_v16 = vsub.f32 %v179_v13, %v187_v15 }
 0x2a0   :  { %v206_v27 = vmul.f32 %v265_v21, %v205_v23 }
 0x2a1   :  { %v192_v18 = vsel %vm190_vm1, %v189_v16, 0.0 }
 0x2a2   :  { %v193_v19 = vadd.f32 %v192_v18, %v191_v17  ;;  %v207_v30 = vadd.f32 %v265_v21, %v206_v27 }
 0x2a4   :  { %194 = vadd.xlane.f32.xlu0 %v193_v19  ;;  %v209_v33 = vsel %vm208_vm2, %v265_v21, %v207_v30 }
 0x317   :  { %v195_v24 = vpop.xlane.xlu0 %194 }
 0x318   :  { %v196_v25 = vrot.slane %v195_v24, 4 }
 0x31a   :  { %v197_v26 = vadd.f32 %v196_v25, %v195_v24 }
 0x31c   :  { %v198_v28 = vrot.slane %v197_v26, 2 }
 0x31e   :  { %v199_v29 = vadd.f32 %v198_v28, %v197_v26 }
 0x320   :  { %v200_v31 = vrot.slane %v199_v29, 1 }
 0x322   :  { %v201_v32 = vadd.f32 %v200_v31, %v199_v29 }
 0x324   :  { %247 = vpush %v201_v32 }
 0x325   :  { %249 = vpush %v209_v33 }
 0x355   :  { %s248_s15 = spop %247 }
 0x356   :  { %s250_s16 = spop %249 }
 0x357   :  { %s211_s17 = smul.f32 %s250_s16, %s248_s15 }
 0x359   :  { %213 = sst [smem:[#allocation2]] %s211_s17 }
 0x35a   :  { %222 = dma.smem_to_hbm %s281_s18, 16, %s220_s14, [#allocation3]  }
 0x35b   :  { %278 = dma.done.wait [#allocation3], 16  }
 0x35c   :  { %279 = vsyncadd [#allocation3], 4294967280 }
 0x35d   :  { %227 = sfence }
 0x35e   :  { %228 = vsyncpa [#allocation3], 1 }

</bundles_post_ra>
